<compile_context>
chip_gen: v6e
topology: v6e:2x2x1
jax: 0.10.0
libtpu: 0.0.40
codegen_flags: <defaults>
</compile_context>

<pallas_src>
import jax
import jax.numpy as jnp
import numpy as np
from jax.experimental import pallas as pl
from jax.experimental.pallas import tpu as pltpu

EPS = 1e-5
DIL = 2   # dilation == padding of the ExitBlock convs
KS = 3    # kernel size


def _bn_packed(h, chan_avg, gamma_p, beta_p, relu):
    """Training-mode BatchNorm2d on a lane-packed (N*H, W*C) tensor.

    chan_avg[l1, l2] = 1/(N*H*W) if lanes l1 and l2 hold the same channel.
    """
    mean_p = jnp.dot(jnp.sum(h, axis=0, keepdims=True), chan_avg,
                     preferred_element_type=jnp.float32)          # (1, W*C)
    d = h - mean_p
    var_p = jnp.dot(jnp.sum(d * d, axis=0, keepdims=True), chan_avg,
                    preferred_element_type=jnp.float32)           # (1, W*C)
    out = d * (gamma_p * jax.lax.rsqrt(var_p + EPS)) + beta_p
    return jnp.maximum(out, 0.0) if relu else out


def _dilated_conv(src_ref, H, bw):
    """One dilated 3x3 conv as a single matmul.

    src_ref: (N, H + 2*DIL, W*Cin) lane-packed rows, H zero-padded by DIL.
    bw:      (KS*W*Cin, W*Cout) banded weight (x padding encoded by omission).
    returns: (N*H, W*Cout) float32.
    """
    parts = [src_ref[:, DIL * k:DIL * k + H, :] for k in range(KS)]
    lhs = jnp.concatenate(parts, axis=-1)                  # (N, H, KS*W*Cin)
    lhs = lhs.reshape(lhs.shape[0] * H, lhs.shape[-1])     # (N*H, KS*W*Cin)
    return jnp.dot(lhs, bw, preferred_element_type=jnp.float32)


def exit_block_kernel(xp_ref, bw1_ref, g1_ref, b1_ref, bw2_ref, g2_ref, b2_ref,
                      cavg_ref, out_ref, hpad_scr):
    N, Hp, WC = xp_ref.shape
    H = Hp - 2 * DIL
    cavg = cavg_ref[...]

    # conv1 -> bn1 -> relu                    (lane-dense (N*H, W*C) tensors)
    h1 = _dilated_conv(xp_ref, H, bw1_ref[...])
    h1 = _bn_packed(h1, cavg, g1_ref[...], b1_ref[...], relu=True)

    # H-pad the intermediate via VMEM scratch: zero only the 2-row borders,
    # the interior store is a full-lane (128-wide) store at a row offset.
    WP = hpad_scr.shape[-1]
    zrows = jnp.zeros((N, DIL, WP), jnp.float32)
    hpad_scr[:, 0:DIL, :] = zrows
    hpad_scr[:, H + DIL:H + 2 * DIL, :] = zrows
    hpad_scr[:, DIL:H + DIL, :] = h1.reshape(N, H, WP)

    # conv2 -> bn2
    h2 = _dilated_conv(hpad_scr, H, bw2_ref[...])
    h2 = _bn_packed(h2, cavg, g2_ref[...], b2_ref[...], relu=False)

    # residual add + relu; residual = interior rows of the padded input.
    res = xp_ref[:, DIL:H + DIL, :].astype(jnp.float32).reshape(N * H, WC)
    out_ref[...] = jnp.maximum(h2 + res, 0.0).astype(out_ref.dtype)


def _banded_weight(w_oihw, W):
    """OIHW (Cout, Cin, 3, 3) conv weight -> (KS*W*Cin, W*Cout) banded matrix.

    bw[ky*W*Cin + xin*Cin + ci, x*Cout + co] = w[co, ci, ky, kx]
    with xin = x + DIL*(kx - 1); taps whose xin falls outside [0, W) are
    dropped, which implements the x-direction zero padding of the conv.
    """
    Cout, Cin, KH, KW = w_oihw.shape
    w = jnp.transpose(w_oihw, (2, 3, 1, 0)).astype(jnp.float32)  # (KH,KW,Cin,Cout)
    sel = np.zeros((KW, W, W), np.float32)
    for kx in range(KW):
        for x in range(W):
            xin = x + DIL * (kx - 1)
            if 0 <= xin < W:
                sel[kx, xin, x] = 1.0
    bw = jnp.einsum("kab,ykic->yaibc", jnp.asarray(sel), w)
    return bw.reshape(KH * W * Cin, W * Cout)


def exit_block(x_nchw, w1_oihw, g1, b1, w2_oihw, g2, b2):
    """Wrapper: NCHW in -> NCHW out, matching the PyTorch ExitBlock forward."""
    N, C, H, W = x_nchw.shape
    P = w1_oihw.shape[0]
    assert C == P, "ExitBlock with downsample=None requires inplanes == planes"
    WC = W * C

    # Lane-dense packing: (N, H + 4, W*C); H padded by 2 with zeros here, the
    # x padding is folded into the banded weights.
    x_nhwc = jnp.transpose(x_nchw, (0, 2, 3, 1)).astype(jnp.float32)
    xp = jnp.pad(x_nhwc, ((0, 0), (DIL, DIL), (0, 0), (0, 0)))
    xp = xp.reshape(N, H + 2 * DIL, WC)

    bw1 = _banded_weight(w1_oihw, W)                      # (KS*W*C, W*P)
    bw2 = _banded_weight(w2_oihw, W)

    # BN params pre-packed to the (1, W*C) lane layout; the channel-averaging
    # matrix folds in the 1/(N*H*W) normalization.
    gp1 = jnp.tile(g1.reshape(1, P).astype(jnp.float32), (1, W))
    bp1 = jnp.tile(b1.reshape(1, P).astype(jnp.float32), (1, W))
    gp2 = jnp.tile(g2.reshape(1, P).astype(jnp.float32), (1, W))
    bp2 = jnp.tile(b2.reshape(1, P).astype(jnp.float32), (1, W))
    cavg = jnp.asarray(np.tile(np.eye(P, dtype=np.float32), (W, W)) /
                       float(N * H * W))

    flops = 2 * 2 * (N * H) * bw1.shape[0] * WC            # two conv matmuls
    bytes_accessed = 4 * (xp.size + bw1.size + bw2.size + cavg.size
                          + 4 * WC + N * H * WC)

    out_packed = pl.pallas_call(
        exit_block_kernel,
        out_shape=jax.ShapeDtypeStruct((N * H, WC), x_nchw.dtype),
        grid=(1,),
        in_specs=[
            pl.BlockSpec((N, H + 2 * DIL, WC), lambda i: (0, 0, 0)),
            pl.BlockSpec(bw1.shape, lambda i: (0, 0)),
            pl.BlockSpec((1, WC), lambda i: (0, 0)),
            pl.BlockSpec((1, WC), lambda i: (0, 0)),
            pl.BlockSpec(bw2.shape, lambda i: (0, 0)),
            pl.BlockSpec((1, WC), lambda i: (0, 0)),
            pl.BlockSpec((1, WC), lambda i: (0, 0)),
            pl.BlockSpec((WC, WC), lambda i: (0, 0)),
        ],
        out_specs=pl.BlockSpec((N * H, WC), lambda i: (0, 0)),
        scratch_shapes=[pltpu.VMEM((N, H + 2 * DIL, WC), jnp.float32)],
        compiler_params=pltpu.CompilerParams(
            dimension_semantics=("arbitrary",)),
        cost_estimate=pl.CostEstimate(
            flops=int(flops), transcendentals=int(2 * WC),
            bytes_accessed=int(bytes_accessed)),
    )(xp, bw1, gp1, bp1, bw2, gp2, bp2, cavg)

    out = out_packed.reshape(N, H, W, P)
    return jnp.transpose(out, (0, 3, 1, 2))                # back to NCHW


def exit_block_reference(x, w1, g1, b1, w2, g2, b2):
    """Pure-JAX reference (NCHW), mirrors the PyTorch ExitBlock forward."""
    def conv(h, w):
        return jax.lax.conv_general_dilated(
            h, w, window_strides=(1, 1), padding=((DIL, DIL), (DIL, DIL)),
            rhs_dilation=(DIL, DIL),
            dimension_numbers=("NCHW", "OIHW", "NCHW"))

    def bn(h, g, be):
        mean = h.mean(axis=(0, 2, 3), keepdims=True)
        var = ((h - mean) ** 2).mean(axis=(0, 2, 3), keepdims=True)
        return (h - mean) * (g.reshape(1, -1, 1, 1) * jax.lax.rsqrt(var + EPS)) \
               + be.reshape(1, -1, 1, 1)

    out = jnp.maximum(bn(conv(x, w1), g1, b1), 0.0)
    out = bn(conv(out, w2), g2, b2)
    return jnp.maximum(out + x, 0.0)


if __name__ == "__main__":
    N, C, H, W = 2, 8, 16, 16          # inplanes == planes == 8 -> W*C = 128
    P = C

    key = jax.random.PRNGKey(0)
    kx, k1, k2 = jax.random.split(key, 3)

    x = jax.random.normal(kx, (N, C, H, W), jnp.float32)
    # conv weights (OIHW, no bias); BN affine params follow PyTorch defaults.
    w1 = 0.1 * jax.random.normal(k1, (P, C, 3, 3), jnp.float32)
    w2 = 0.1 * jax.random.normal(k2, (P, P, 3, 3), jnp.float32)
    g1 = jnp.ones((P,), jnp.float32)
    b1 = jnp.zeros((P,), jnp.float32)
    g2 = jnp.ones((P,), jnp.float32)
    b2 = jnp.zeros((P,), jnp.float32)

    out = jax.block_until_ready(exit_block(x, w1, g1, b1, w2, g2, b2))
    ref = jax.block_until_ready(exit_block_reference(x, w1, g1, b1, w2, g2, b2))
    np.testing.assert_allclose(np.asarray(out), np.asarray(ref),
                               rtol=2e-4, atol=2e-4)

    print("KERNEL_OK")
</pallas_src>

<mosaic_0001>
module attributes {stable_mosaic.version = 11 : i64} {
  func.func @exit_block_kernel(%arg0: i32, %arg1: memref<2x20x128xf32, #tpu.memory_space<vmem>>, %arg2: memref<384x128xf32, #tpu.memory_space<vmem>>, %arg3: memref<1x128xf32, #tpu.memory_space<vmem>>, %arg4: memref<1x128xf32, #tpu.memory_space<vmem>>, %arg5: memref<384x128xf32, #tpu.memory_space<vmem>>, %arg6: memref<1x128xf32, #tpu.memory_space<vmem>>, %arg7: memref<1x128xf32, #tpu.memory_space<vmem>>, %arg8: memref<128x128xf32, #tpu.memory_space<vmem>>, %arg9: memref<32x128xf32, #tpu.memory_space<vmem>>, %arg10: memref<2x20x128xf32, #tpu.memory_space<vmem>>) attributes {dimension_semantics = [#tpu.dimension_semantics<arbitrary>], iteration_bounds = array<i64: 1>, scalar_prefetch = 0 : i64, scratch_operands = 1 : i64, tpu.core_type = #tpu.core_type<tc>, window_params = [{pipeline_mode = #tpu.pipeline_mode<synchronous>, transform_indices = @transform_0, window_bounds = array<i64: 2, 20, 128>}, {pipeline_mode = #tpu.pipeline_mode<synchronous>, transform_indices = @transform_1, window_bounds = array<i64: 384, 128>}, {pipeline_mode = #tpu.pipeline_mode<synchronous>, transform_indices = @transform_2, window_bounds = array<i64: 1, 128>}, {pipeline_mode = #tpu.pipeline_mode<synchronous>, transform_indices = @transform_3, window_bounds = array<i64: 1, 128>}, {pipeline_mode = #tpu.pipeline_mode<synchronous>, transform_indices = @transform_4, window_bounds = array<i64: 384, 128>}, {pipeline_mode = #tpu.pipeline_mode<synchronous>, transform_indices = @transform_5, window_bounds = array<i64: 1, 128>}, {pipeline_mode = #tpu.pipeline_mode<synchronous>, transform_indices = @transform_6, window_bounds = array<i64: 1, 128>}, {pipeline_mode = #tpu.pipeline_mode<synchronous>, transform_indices = @transform_7, window_bounds = array<i64: 128, 128>}, {pipeline_mode = #tpu.pipeline_mode<synchronous>, transform_indices = @transform_8, window_bounds = array<i64: 32, 128>}]} {
    %c0 = arith.constant 0 : index
    %c0_0 = arith.constant 0 : index
    %0 = vector.load %arg8[%c0, %c0_0] : memref<128x128xf32, #tpu.memory_space<vmem>>, vector<128x128xf32>
    %c0_1 = arith.constant 0 : index
    %c0_2 = arith.constant 0 : index
    %1 = vector.load %arg2[%c0_1, %c0_2] : memref<384x128xf32, #tpu.memory_space<vmem>>, vector<384x128xf32>
    %c0_3 = arith.constant 0 : index
    %c0_4 = arith.constant 0 : index
    %c0_5 = arith.constant 0 : index
    %2 = vector.load %arg1[%c0_3, %c0_4, %c0_5] : memref<2x20x128xf32, #tpu.memory_space<vmem>>, vector<2x16x128xf32>
    %c0_6 = arith.constant 0 : index
    %c2 = arith.constant 2 : index
    %c0_7 = arith.constant 0 : index
    %3 = vector.load %arg1[%c0_6, %c2, %c0_7] : memref<2x20x128xf32, #tpu.memory_space<vmem>>, vector<2x16x128xf32>
    %c0_8 = arith.constant 0 : index
    %c4 = arith.constant 4 : index
    %c0_9 = arith.constant 0 : index
    %4 = vector.load %arg1[%c0_8, %c4, %c0_9] : memref<2x20x128xf32, #tpu.memory_space<vmem>>, vector<2x16x128xf32>
    %5 = tpu.concatenate %2, %3, %4 in 2 : vector<2x16x128xf32>, vector<2x16x128xf32>, vector<2x16x128xf32> -> vector<2x16x384xf32>
    %6 = vector.shape_cast %5 : vector<2x16x384xf32> to vector<32x384xf32>
    %cst = arith.constant dense<0.000000e+00> : vector<32x128xf32>
    %7 = tpu.matmul %6, %1, %cst {dimension_numbers = #tpu.dot_dimension_numbers<[1], [0], [0], [1], [0, 0, 1, 1], [], []>} : vector<32x384xf32>, vector<384x128xf32>, vector<32x128xf32> -> vector<32x128xf32>
    %c0_10 = arith.constant 0 : index
    %c0_11 = arith.constant 0 : index
    %8 = vector.load %arg3[%c0_10, %c0_11] : memref<1x128xf32, #tpu.memory_space<vmem>>, vector<1x128xf32>
    %c0_12 = arith.constant 0 : index
    %c0_13 = arith.constant 0 : index
    %9 = vector.load %arg4[%c0_12, %c0_13] : memref<1x128xf32, #tpu.memory_space<vmem>>, vector<1x128xf32>
    %cst_14 = arith.constant dense<0.000000e+00> : vector<128xf32>
    %10 = vector.multi_reduction <add>, %7, %cst_14 [0] : vector<32x128xf32> to vector<128xf32>
    %11 = vector.shape_cast %10 : vector<128xf32> to vector<1x128xf32>
    %cst_15 = arith.constant dense<0.000000e+00> : vector<1x128xf32>
    %12 = tpu.matmul %11, %0, %cst_15 {dimension_numbers = #tpu.dot_dimension_numbers<[1], [0], [0], [1], [0, 0, 1, 1], [], []>} : vector<1x128xf32>, vector<128x128xf32>, vector<1x128xf32> -> vector<1x128xf32>
    %13 = vector.broadcast %12 : vector<1x128xf32> to vector<32x128xf32>
    %14 = arith.subf %7, %13 : vector<32x128xf32>
    %15 = arith.mulf %14, %14 : vector<32x128xf32>
    %cst_16 = arith.constant dense<0.000000e+00> : vector<128xf32>
    %16 = vector.multi_reduction <add>, %15, %cst_16 [0] : vector<32x128xf32> to vector<128xf32>
    %17 = vector.shape_cast %16 : vector<128xf32> to vector<1x128xf32>
    %cst_17 = arith.constant dense<0.000000e+00> : vector<1x128xf32>
    %18 = tpu.matmul %17, %0, %cst_17 {dimension_numbers = #tpu.dot_dimension_numbers<[1], [0], [0], [1], [0, 0, 1, 1], [], []>} : vector<1x128xf32>, vector<128x128xf32>, vector<1x128xf32> -> vector<1x128xf32>
    %cst_18 = arith.constant 9.99999974E-6 : f32
    %19 = vector.broadcast %cst_18 : f32 to vector<1x128xf32>
    %20 = arith.addf %18, %19 : vector<1x128xf32>
    %21 = math.rsqrt %20 : vector<1x128xf32>
    %22 = arith.mulf %8, %21 : vector<1x128xf32>
    %23 = vector.broadcast %22 : vector<1x128xf32> to vector<32x128xf32>
    %24 = arith.mulf %14, %23 : vector<32x128xf32>
    %25 = vector.broadcast %9 : vector<1x128xf32> to vector<32x128xf32>
    %26 = arith.addf %24, %25 : vector<32x128xf32>
    %cst_19 = arith.constant 0.000000e+00 : f32
    %27 = vector.broadcast %cst_19 : f32 to vector<32x128xf32>
    %28 = arith.maximumf %26, %27 : vector<32x128xf32>
    %cst_20 = arith.constant 0.000000e+00 : f32
    %29 = vector.broadcast %cst_20 : f32 to vector<2x2x128xf32>
    %c0_21 = arith.constant 0 : index
    %c0_22 = arith.constant 0 : index
    %c0_23 = arith.constant 0 : index
    %30 = vector.load %arg10[%c0_21, %c0_22, %c0_23] : memref<2x20x128xf32, #tpu.memory_space<vmem>>, vector<2x2x128xf32>
    tpu.vector_store %arg10[%c0_21, %c0_22, %c0_23], %29 {strides = array<i32>} : memref<2x20x128xf32, #tpu.memory_space<vmem>>, vector<2x2x128xf32>,
    %c0_24 = arith.constant 0 : index
    %c18 = arith.constant 18 : index
    %c0_25 = arith.constant 0 : index
    %31 = vector.load %arg10[%c0_24, %c18, %c0_25] : memref<2x20x128xf32, #tpu.memory_space<vmem>>, vector<2x2x128xf32>
    tpu.vector_store %arg10[%c0_24, %c18, %c0_25], %29 {strides = array<i32>} : memref<2x20x128xf32, #tpu.memory_space<vmem>>, vector<2x2x128xf32>,
    %32 = vector.shape_cast %28 : vector<32x128xf32> to vector<2x16x128xf32>
    %c0_26 = arith.constant 0 : index
    %c2_27 = arith.constant 2 : index
    %c0_28 = arith.constant 0 : index
    %33 = vector.load %arg10[%c0_26, %c2_27, %c0_28] : memref<2x20x128xf32, #tpu.memory_space<vmem>>, vector<2x16x128xf32>
    tpu.vector_store %arg10[%c0_26, %c2_27, %c0_28], %32 {strides = array<i32>} : memref<2x20x128xf32, #tpu.memory_space<vmem>>, vector<2x16x128xf32>,
    %c0_29 = arith.constant 0 : index
    %c0_30 = arith.constant 0 : index
    %34 = vector.load %arg5[%c0_29, %c0_30] : memref<384x128xf32, #tpu.memory_space<vmem>>, vector<384x128xf32>
    %c0_31 = arith.constant 0 : index
    %c0_32 = arith.constant 0 : index
    %c0_33 = arith.constant 0 : index
    %35 = vector.load %arg10[%c0_31, %c0_32, %c0_33] : memref<2x20x128xf32, #tpu.memory_space<vmem>>, vector<2x16x128xf32>
    %c0_34 = arith.constant 0 : index
    %c2_35 = arith.constant 2 : index
    %c0_36 = arith.constant 0 : index
    %36 = vector.load %arg10[%c0_34, %c2_35, %c0_36] : memref<2x20x128xf32, #tpu.memory_space<vmem>>, vector<2x16x128xf32>
    %c0_37 = arith.constant 0 : index
    %c4_38 = arith.constant 4 : index
    %c0_39 = arith.constant 0 : index
    %37 = vector.load %arg10[%c0_37, %c4_38, %c0_39] : memref<2x20x128xf32, #tpu.memory_space<vmem>>, vector<2x16x128xf32>
    %38 = tpu.concatenate %35, %36, %37 in 2 : vector<2x16x128xf32>, vector<2x16x128xf32>, vector<2x16x128xf32> -> vector<2x16x384xf32>
    %39 = vector.shape_cast %38 : vector<2x16x384xf32> to vector<32x384xf32>
    %cst_40 = arith.constant dense<0.000000e+00> : vector<32x128xf32>
    %40 = tpu.matmul %39, %34, %cst_40 {dimension_numbers = #tpu.dot_dimension_numbers<[1], [0], [0], [1], [0, 0, 1, 1], [], []>} : vector<32x384xf32>, vector<384x128xf32>, vector<32x128xf32> -> vector<32x128xf32>
    %c0_41 = arith.constant 0 : index
    %c0_42 = arith.constant 0 : index
    %41 = vector.load %arg6[%c0_41, %c0_42] : memref<1x128xf32, #tpu.memory_space<vmem>>, vector<1x128xf32>
    %c0_43 = arith.constant 0 : index
    %c0_44 = arith.constant 0 : index
    %42 = vector.load %arg7[%c0_43, %c0_44] : memref<1x128xf32, #tpu.memory_space<vmem>>, vector<1x128xf32>
    %cst_45 = arith.constant dense<0.000000e+00> : vector<128xf32>
    %43 = vector.multi_reduction <add>, %40, %cst_45 [0] : vector<32x128xf32> to vector<128xf32>
    %44 = vector.shape_cast %43 : vector<128xf32> to vector<1x128xf32>
    %cst_46 = arith.constant dense<0.000000e+00> : vector<1x128xf32>
    %45 = tpu.matmul %44, %0, %cst_46 {dimension_numbers = #tpu.dot_dimension_numbers<[1], [0], [0], [1], [0, 0, 1, 1], [], []>} : vector<1x128xf32>, vector<128x128xf32>, vector<1x128xf32> -> vector<1x128xf32>
    %46 = vector.broadcast %45 : vector<1x128xf32> to vector<32x128xf32>
    %47 = arith.subf %40, %46 : vector<32x128xf32>
    %48 = arith.mulf %47, %47 : vector<32x128xf32>
    %cst_47 = arith.constant dense<0.000000e+00> : vector<128xf32>
    %49 = vector.multi_reduction <add>, %48, %cst_47 [0] : vector<32x128xf32> to vector<128xf32>
    %50 = vector.shape_cast %49 : vector<128xf32> to vector<1x128xf32>
    %cst_48 = arith.constant dense<0.000000e+00> : vector<1x128xf32>
    %51 = tpu.matmul %50, %0, %cst_48 {dimension_numbers = #tpu.dot_dimension_numbers<[1], [0], [0], [1], [0, 0, 1, 1], [], []>} : vector<1x128xf32>, vector<128x128xf32>, vector<1x128xf32> -> vector<1x128xf32>
    %cst_49 = arith.constant 9.99999974E-6 : f32
    %52 = vector.broadcast %cst_49 : f32 to vector<1x128xf32>
    %53 = arith.addf %51, %52 : vector<1x128xf32>
    %54 = math.rsqrt %53 : vector<1x128xf32>
    %55 = arith.mulf %41, %54 : vector<1x128xf32>
    %56 = vector.broadcast %55 : vector<1x128xf32> to vector<32x128xf32>
    %57 = arith.mulf %47, %56 : vector<32x128xf32>
    %58 = vector.broadcast %42 : vector<1x128xf32> to vector<32x128xf32>
    %59 = arith.addf %57, %58 : vector<32x128xf32>
    %c0_50 = arith.constant 0 : index
    %c2_51 = arith.constant 2 : index
    %c0_52 = arith.constant 0 : index
    %60 = vector.load %arg1[%c0_50, %c2_51, %c0_52] : memref<2x20x128xf32, #tpu.memory_space<vmem>>, vector<2x16x128xf32>
    %61 = vector.shape_cast %60 : vector<2x16x128xf32> to vector<32x128xf32>
    %62 = arith.addf %59, %61 : vector<32x128xf32>
    %cst_53 = arith.constant 0.000000e+00 : f32
    %63 = vector.broadcast %cst_53 : f32 to vector<32x128xf32>
    %64 = arith.maximumf %62, %63 : vector<32x128xf32>
    %c0_54 = arith.constant 0 : index
    %c0_55 = arith.constant 0 : index
    %65 = vector.load %arg9[%c0_54, %c0_55] : memref<32x128xf32, #tpu.memory_space<vmem>>, vector<32x128xf32>
    tpu.vector_store %arg9[%c0_54, %c0_55], %64 {strides = array<i32>} : memref<32x128xf32, #tpu.memory_space<vmem>>, vector<32x128xf32>,
    return
  }
  func.func @transform_0(%arg0: i32) -> (i32, i32, i32) {
    %c0_i32 = arith.constant 0 : i32
    %c0_i32_0 = arith.constant 0 : i32
    %c0_i32_1 = arith.constant 0 : i32
    %c0_i32_2 = arith.constant 0 : i32
    return %c0_i32, %c0_i32_0, %c0_i32_1 : i32, i32, i32
  }
  func.func @transform_1(%arg0: i32) -> (i32, i32) {
    %c0_i32 = arith.constant 0 : i32
    %c0_i32_0 = arith.constant 0 : i32
    %c0_i32_1 = arith.constant 0 : i32
    return %c0_i32, %c0_i32_0 : i32, i32
  }
  func.func @transform_2(%arg0: i32) -> (i32, i32) {
    %c0_i32 = arith.constant 0 : i32
    %c0_i32_0 = arith.constant 0 : i32
    %c0_i32_1 = arith.constant 0 : i32
    return %c0_i32, %c0_i32_0 : i32, i32
  }
  func.func @transform_3(%arg0: i32) -> (i32, i32) {
    %c0_i32 = arith.constant 0 : i32
    %c0_i32_0 = arith.constant 0 : i32
    %c0_i32_1 = arith.constant 0 : i32
    return %c0_i32, %c0_i32_0 : i32, i32
  }
  func.func @transform_4(%arg0: i32) -> (i32, i32) {
    %c0_i32 = arith.constant 0 : i32
    %c0_i32_0 = arith.constant 0 : i32
    %c0_i32_1 = arith.constant 0 : i32
    return %c0_i32, %c0_i32_0 : i32, i32
  }
  func.func @transform_5(%arg0: i32) -> (i32, i32) {
    %c0_i32 = arith.constant 0 : i32
    %c0_i32_0 = arith.constant 0 : i32
    %c0_i32_1 = arith.constant 0 : i32
    return %c0_i32, %c0_i32_0 : i32, i32
  }
  func.func @transform_6(%arg0: i32) -> (i32, i32) {
    %c0_i32 = arith.constant 0 : i32
    %c0_i32_0 = arith.constant 0 : i32
    %c0_i32_1 = arith.constant 0 : i32
    return %c0_i32, %c0_i32_0 : i32, i32
  }
  func.func @transform_7(%arg0: i32) -> (i32, i32) {
    %c0_i32 = arith.constant 0 : i32
    %c0_i32_0 = arith.constant 0 : i32
    %c0_i32_1 = arith.constant 0 : i32
    return %c0_i32, %c0_i32_0 : i32, i32
  }
  func.func @transform_8(%arg0: i32) -> (i32, i32) {
    %c0_i32 = arith.constant 0 : i32
    %c0_i32_0 = arith.constant 0 : i32
    %c0_i32_1 = arith.constant 0 : i32
    return %c0_i32, %c0_i32_0 : i32, i32
  }
}

</mosaic_0001>

<bundles_post_ra>
// kernel: tpu_custom_call.1
= control target key start
LH: loop header
LB: loop body
LE: loop exit
PB: predicated region body
PF: predicated region fallthrough
CT: control target
= control target key end

     0   :  { %13 = vsyncpa [#allocation4], 0  ;;  %s1832_s0 = inlined_call_operand.vmem [shape: f32[2,20,128], index: 0, kind: input, shape index: {}]   ;;  %s1833_s1 = inlined_call_operand.hbm [shape: f32[384,128], index: 1, kind: input, shape index: {}]   ;;  %s1834_s2 = inlined_call_operand.vmem [shape: f32[1,128], index: 2, kind: input, shape index: {}]   ;;  %s1835_s3 = inlined_call_operand.vmem [shape: f32[1,128], index: 3, kind: input, shape index: {}]   ;;  %s1836_s4 = inlined_call_operand.hbm [shape: f32[384,128], index: 4, kind: input, shape index: {}]   ;;  %s1837_s5 = inlined_call_operand.vmem [shape: f32[1,128], index: 5, kind: input, shape index: {}]   ;;  %s1838_s6 = inlined_call_operand.vmem [shape: f32[1,128], index: 6, kind: input, shape index: {}]   ;;  %s1839_s7 = inlined_call_operand.hbm [shape: f32[128,128], index: 7, kind: input, shape index: {}]   ;;  %s1840_s8 = inlined_call_operand.hbm [shape: f32[32,128], index: 8, kind: output, shape index: {}]  }
   0x1   :  { %14 = vsyncpa [#allocation7], 0 }
   0x2   :  { %15 = vsyncpa [#allocation5], 0  ;;  %s1493_s27 = smov [#allocation6]   ;;  %s1494_s29 = smov [#allocation3]  }
   0x3   :  { %s39_s28 = sshll.u32 %s1493_s27, 4  ;;  %s23_s30 = sshll.u32 %s1494_s29, 4  ;;  %s40_s28 = int_to_ptr.vmem [resolvable:$true] %s39_s28  ;;  %s24_s30 = int_to_ptr.vmem [resolvable:$true] %s23_s30 }
   0x4   :  { %s1415_s9 = scalar_lea.vmem %s40_s28, 6144  ;;  %p1420_p1 = scmp.lt.s32.totalorder %s40_s28, %s40_s28 }
   0x5   :  { %p1416_p0 = scmp.ne.s32.totalorder %s40_s28, %s1415_s9  ;;  %p1421_p2 = scmp.lt.s32.totalorder %s1415_s9, %s1415_s9 }
   0x7   :  { %p1422_p3 = por %p1421_p2, %p1420_p1 }
   0x9   :  { %p1423_p4 = pnand %p1422_p3, %p1416_p0 }
   0xb   :  { %1426 = shalt.err (!%p1423_p4)
}
   0xc   :  { %s1495_s10 = smov 128   ;;  %s1496_s11 = smov 8  }
   0xd   :  { %45 = dma.hbm_to_vmem [thread:$0]  %s1836_s4, 6144, %s40_s28, [#allocation7], %s1495_s10, %s1495_s10, %s1496_s11  }
   0xe   :  { %s1435_s14 = scalar_lea.vmem %s24_s30, 6144  ;;  %p1440_p6 = scmp.lt.s32.totalorder %s24_s30, %s24_s30 }
   0xf   :  { %p1436_p5 = scmp.ne.s32.totalorder %s24_s30, %s1435_s14  ;;  %p1441_p7 = scmp.lt.s32.totalorder %s1435_s14, %s1435_s14 }
  0x11   :  { %p1442_p8 = por %p1441_p7, %p1440_p6 }
  0x13   :  { %p1443_p9 = pnand %p1442_p8, %p1436_p5 }
  0x15   :  { %1446 = shalt.err (!%p1443_p9)
}
  0x16   :  { %29 = dma.hbm_to_vmem [thread:$0]  %s1833_s1, 6144, %s24_s30, [#allocation4], %s1495_s10, %s1495_s10, %s1496_s11  }
  0x17   :  { %s1497_s17 = smov [#allocation8]  }
  0x18   :  { %s55_s18 = sshll.u32 %s1497_s17, 4  ;;  %s56_s18 = int_to_ptr.vmem [resolvable:$true] %s55_s18 }
  0x19   :  { %s1455_s19 = scalar_lea.vmem %s56_s18, 2048  ;;  %p1460_p11 = scmp.lt.s32.totalorder %s56_s18, %s56_s18 }
  0x1a   :  { %p1456_p10 = scmp.ne.s32.totalorder %s56_s18, %s1455_s19  ;;  %p1461_p12 = scmp.lt.s32.totalorder %s1455_s19, %s1455_s19 }
  0x1c   :  { %p1462_p13 = por %p1461_p12, %p1460_p11 }
  0x1e   :  { %p1463_p0 = pnand %p1462_p13, %p1456_p10 }
  0x20   :  { %1466 = shalt.err (!%p1463_p0)
}
  0x21   :  { %61 = dma.hbm_to_vmem [thread:$0]  %s1839_s7, 2048, %s56_s18, [#allocation7], %s1495_s10, %s1495_s10, %s1496_s11  }
  0x22   :  { %1487 = dma.done.wait [#allocation4], 6144  }
  0x23   :  { %1488 = vsyncadd [#allocation4], 4294961152 }
  0x24   :  { %1489 = dma.done.wait [#allocation7], 8192  }
  0x25   :  { %1490 = vsyncadd [#allocation7], 4294959104  ;;  %v118_v0 = vld [vmem:[#allocation3 + $0xf8] sm:$0xff]  ;;  %v117_v2 = vld [vmem:[#allocation3 + $0xf0] sm:$0xff]  ;;  %v1498_v60 = vmov 0.0   ;;  %vm1499_vm0 = vmmov 0  }
  0x26   :  { %v102_v1 = vld [vmem:[#allocation3 + $0x78] sm:$0xff]  ;;  %983 = vmatprep.subr.mxu0 %v118_v0  ;;  %v101_v4 = vld [vmem:[#allocation3 + $0x70] sm:$0xff]  ;;  %v116_v5 = vld [vmem:[#allocation3 + $0xe8] sm:$0xff]  ;;  %515 = vst [vmem:[#allocation2] sm:$0x3] %v1498_v60  ;;  %s1500_s25 = smov [#allocation9]  }
  0x27   :  { %v134_v3 = vld [vmem:[#allocation3 + $0x178] sm:$0xff]  ;;  %984 = vmatpush3.msra.mxu0 %v102_v1  ;;  %v133_v6 = vld [vmem:[#allocation3 + $0x170] sm:$0xff]  ;;  %v100_v7 = vld [vmem:[#allocation3 + $0x68] sm:$0xff]  ;;  %516 = vst [vmem:[#allocation2 + $0x18] sm:$0x3] %v1498_v60  ;;  %s968_s26 = sshll.u32 %s1500_s25, 4  ;;  %s969_s26 = int_to_ptr.vmem [resolvable:$true] %s968_s26 }
  0x28   :  { %1179 = vmatprep.subr.mxu1 %v134_v3  ;;  %985 = vmatprep.subr.mxu0 %v117_v2  ;;  %v132_v8 = vld [vmem:[#allocation3 + $0x168] sm:$0xff]  ;;  %v115_v9 = vld [vmem:[#allocation3 + $0xe0] sm:$0xff]  ;;  %v114_v12 = vld [vmem:[#allocation3 + $0xd8] sm:$0xff]  ;;  %517 = vst [vmem:[#allocation2 + $0x12] sm:$0x3] %v1498_v60  ;;  %p1472_p2 = scmp.lt.s32.totalorder %s969_s26, %s969_s26 }
  0x29   :  { %1180 = vmatpush3.msra.mxu1 %v134_v3  ;;  %986 = vmatpush3.msra.mxu0 %v101_v4  ;;  %v99_v10 = vld [vmem:[#allocation3 + $0x60] sm:$0xff]  ;;  %v98_v13 = vld [vmem:[#allocation3 + $0x58] sm:$0xff]  ;;  %v113_v15 = vld [vmem:[#allocation3 + $0xd0] sm:$0xff]  ;;  %518 = vst [vmem:[#allocation2 + $0x2a] sm:$0x3] %v1498_v60 }
  0x2a   :  { %1181 = vmatprep.subr.mxu1 %v133_v6  ;;  %987 = vmatprep.subr.mxu0 %v116_v5  ;;  %v131_v11 = vld [vmem:[#allocation3 + $0x160] sm:$0xff]  ;;  %v130_v14 = vld [vmem:[#allocation3 + $0x158] sm:$0xff]  ;;  %v97_v16 = vld [vmem:[#allocation3 + $0x50] sm:$0xff] }
  0x2b   :  { %1182 = vmatpush3.msra.mxu1 %v133_v6  ;;  %988 = vmatpush3.msra.mxu0 %v100_v7  ;;  %v129_v17 = vld [vmem:[#allocation3 + $0x150] sm:$0xff]  ;;  %v112_v18 = vld [vmem:[#allocation3 + $0xc8] sm:$0xff]  ;;  %v111_v21 = vld [vmem:[#allocation3 + $0xc0] sm:$0xff] }
  0x2c   :  { %1183 = vmatprep.subr.mxu1 %v132_v8  ;;  %989 = vmatprep.subr.mxu0 %v115_v9  ;;  %v96_v19 = vld [vmem:[#allocation3 + $0x48] sm:$0xff]  ;;  %v95_v22 = vld [vmem:[#allocation3 + $0x40] sm:$0xff]  ;;  %v110_v24 = vld [vmem:[#allocation3 + $0xb8] sm:$0xff] }
  0x2d   :  { %1184 = vmatpush3.msra.mxu1 %v132_v8  ;;  %990 = vmatpush3.msra.mxu0 %v99_v10  ;;  %v128_v20 = vld [vmem:[#allocation3 + $0x148] sm:$0xff]  ;;  %v127_v23 = vld [vmem:[#allocation3 + $0x140] sm:$0xff]  ;;  %v94_v25 = vld [vmem:[#allocation3 + $0x38] sm:$0xff] }
  0x2e   :  { %1185 = vmatprep.subr.mxu1 %v131_v11  ;;  %991 = vmatprep.subr.mxu0 %v114_v12  ;;  %v126_v26 = vld [vmem:[#allocation3 + $0x138] sm:$0xff]  ;;  %v109_v27 = vld [vmem:[#allocation3 + $0xb0] sm:$0xff]  ;;  %v108_v30 = vld [vmem:[#allocation3 + $0xa8] sm:$0xff] }
  0x2f   :  { %1186 = vmatpush3.msra.mxu1 %v131_v11  ;;  %992 = vmatpush3.msra.mxu0 %v98_v13  ;;  %v93_v28 = vld [vmem:[#allocation3 + $0x30] sm:$0xff]  ;;  %v92_v31 = vld [vmem:[#allocation3 + $0x28] sm:$0xff]  ;;  %v107_v33 = vld [vmem:[#allocation3 + $0xa0] sm:$0xff] }
  0x30   :  { %1187 = vmatprep.subr.mxu1 %v130_v14  ;;  %993 = vmatprep.subr.mxu0 %v113_v15  ;;  %v125_v29 = vld [vmem:[#allocation3 + $0x130] sm:$0xff]  ;;  %v124_v32 = vld [vmem:[#allocation3 + $0x128] sm:$0xff]  ;;  %v91_v34 = vld [vmem:[#allocation3 + $0x20] sm:$0xff] }
  0x31   :  { %1188 = vmatpush3.msra.mxu1 %v130_v14  ;;  %994 = vmatpush3.msra.mxu0 %v97_v16  ;;  %v123_v35 = vld [vmem:[#allocation3 + $0x120] sm:$0xff]  ;;  %v106_v36 = vld [vmem:[#allocation3 + $0x98] sm:$0xff]  ;;  %v105_v39 = vld [vmem:[#allocation3 + $0x90] sm:$0xff] }
  0x32   :  { %1189 = vmatprep.subr.mxu1 %v129_v17  ;;  %995 = vmatprep.subr.mxu0 %v112_v18  ;;  %v90_v37 = vld [vmem:[#allocation3 + $0x18] sm:$0xff]  ;;  %v89_v40 = vld [vmem:[#allocation3 + $0x10] sm:$0xff]  ;;  %v104_v42 = vld [vmem:[#allocation3 + $0x88] sm:$0xff] }
  0x33   :  { %1190 = vmatpush3.msra.mxu1 %v129_v17  ;;  %996 = vmatpush3.msra.mxu0 %v96_v19  ;;  %v122_v38 = vld [vmem:[#allocation3 + $0x118] sm:$0xff]  ;;  %v121_v41 = vld [vmem:[#allocation3 + $0x110] sm:$0xff]  ;;  %v88_v43 = vld [vmem:[#allocation3 + $0x8] sm:$0xff] }
  0x34   :  { %1191 = vmatprep.subr.mxu1 %v128_v20  ;;  %997 = vmatprep.subr.mxu0 %v111_v21  ;;  %v120_v44 = vld [vmem:[#allocation3 + $0x108] sm:$0xff]  ;;  %v103_v45 = vld [vmem:[#allocation3 + $0x80] sm:$0xff]  ;;  %v1567_v46 = vld [vmem:[%s1832_s0 + $0x2] sm:$0xff] }
  0x35   :  { %1192 = vmatpush3.msra.mxu1 %v128_v20  ;;  %998 = vmatpush3.msra.mxu0 %v95_v22  ;;  %v87_v47 = vld [vmem:[#allocation3] sm:$0xff]  ;;  %v135_v48 = vld [vmem:[%s1832_s0] sm:$0xff]  ;;  %v136_v54 = vld [vmem:[%s1832_s0 + $0x8] sm:$0xff] }
  0x36   :  { %1193 = vmatprep.subr.mxu1 %v127_v23  ;;  %999 = vmatprep.subr.mxu0 %v110_v24  ;;  %v119_v49 = vld [vmem:[#allocation3 + $0x100] sm:$0xff]  ;;  %v143_v50 = vld [vmem:[%s1832_s0 + $0x4] sm:$0xff]  ;;  %v145_v53 = vld [vmem:[%s1832_s0 + $0x1c] sm:$0xff] }
  0x37   :  { %1194 = vmatpush3.msra.mxu1 %v127_v23  ;;  %1000 = vmatpush3.msra.mxu0 %v94_v25  ;;  %v144_v51 = vld [vmem:[%s1832_s0 + $0xc] sm:$0xff]  ;;  %v1594_v55 = vld [vmem:[%s1832_s0 + $0x1a] sm:$0xff]  ;;  %v146_v56 = vld [vmem:[%s1832_s0 + $0x24] sm:$0xff] }
  0x38   :  { %1195 = vmatprep.subr.mxu1 %v126_v26  ;;  %1001 = vmatprep.subr.mxu0 %v109_v27  ;;  %v1582_v52 = vld [vmem:[%s1832_s0 + $0xa] sm:$0xff]  ;;  %v137_v57 = vld [vmem:[%s1832_s0 + $0x18] sm:$0xff]  ;;  %v1606_v58 = vld [vmem:[%s1832_s0 + $0x22] sm:$0xff] }
  0x39   :  { %1196 = vmatpush3.msra.mxu1 %v126_v26  ;;  %1002 = vmatpush3.msra.mxu0 %v93_v28  ;;  %v138_v59 = vld [vmem:[%s1832_s0 + $0x20] sm:$0xff]  ;;  %v1617_v61 = vld [vmem:[#allocation8 + $0x78] sm:$0xff]  ;;  %v1629_v63 = vld [vmem:[#allocation8 + $0x68] sm:$0xff] }
  0x3a   :  { %1197 = vmatprep.subr.mxu1 %v125_v29  ;;  %1003 = vmatprep.subr.mxu0 %v108_v30  ;;  %v1623_v62 = vld [vmem:[#allocation8 + $0x70] sm:$0xff]  ;;  %v1635_v0 = vld [vmem:[#allocation8 + $0x60] sm:$0xff]  ;;  %v1641_v1 = vld [vmem:[#allocation8 + $0x58] sm:$0xff] }
  0x3b   :  { %1198 = vmatpush3.msra.mxu1 %v125_v29  ;;  %1004 = vmatpush3.msra.mxu0 %v92_v31  ;;  %v1647_v2 = vld [vmem:[#allocation8 + $0x50] sm:$0xff]  ;;  %v1653_v3 = vld [vmem:[#allocation8 + $0x48] sm:$0xff]  ;;  %v1659_v4 = vld [vmem:[#allocation8 + $0x40] sm:$0xff] }
  0x3c   :  { %1199 = vmatprep.subr.mxu1 %v124_v32  ;;  %1005 = vmatprep.subr.mxu0 %v107_v33  ;;  %v1665_v5 = vld [vmem:[#allocation8 + $0x38] sm:$0xff]  ;;  %v1671_v6 = vld [vmem:[#allocation8 + $0x30] sm:$0xff]  ;;  %v1677_v7 = vld [vmem:[#allocation8 + $0x28] sm:$0xff] }
  0x3d   :  { %1200 = vmatpush3.msra.mxu1 %v124_v32  ;;  %1006 = vmatpush3.msra.mxu0 %v91_v34  ;;  %v1683_v8 = vld [vmem:[#allocation8 + $0x20] sm:$0xff]  ;;  %v1689_v9 = vld [vmem:[#allocation8 + $0x18] sm:$0xff]  ;;  %v1695_v10 = vld [vmem:[#allocation8 + $0x10] sm:$0xff] }
  0x3e   :  { %1201 = vmatprep.subr.mxu1 %v123_v35  ;;  %1007 = vmatprep.subr.mxu0 %v106_v36  ;;  %v1701_v11 = vld [vmem:[#allocation8 + $0x8] sm:$0xff]  ;;  %v1707_v12 = vld [vmem:[#allocation8] sm:$0xff] }
  0x3f   :  { %1202 = vmatpush3.msra.mxu1 %v123_v35  ;;  %1008 = vmatpush3.msra.mxu0 %v90_v37 }
  0x40   :  { %1203 = vmatprep.subr.mxu1 %v122_v38  ;;  %1009 = vmatprep.subr.mxu0 %v105_v39 }
  0x41   :  { %1204 = vmatpush3.msra.mxu1 %v122_v38  ;;  %1010 = vmatpush3.msra.mxu0 %v89_v40 }
  0x42   :  { %1205 = vmatprep.subr.mxu1 %v121_v41  ;;  %1011 = vmatprep.subr.mxu0 %v104_v42  ;;  %v398_v42 = vlaneseq }
  0x43   :  { %1206 = vmatpush3.msra.mxu1 %v121_v41  ;;  %1012 = vmatpush3.msra.mxu0 %v88_v43 }
  0x44   :  { %1207 = vmatprep.subr.mxu1 %v120_v44  ;;  %1013 = vmatprep.subr.mxu0 %v103_v45  ;;  %v399_v43 = vshrl.u32 %v398_v42, 7  ;;  %v532_v42 = vld [vmem:[#allocation6 + $0x48] sm:$0xff] }
  0x45   :  { %211 = vmatprep.mubr.f32.mxu0 %v1567_v46  ;;  %1014 = vmatpush3.msra.mxu0 %v87_v47 }
  0x46   :  { %1208 = vmatpush3.msra.mxu1 %v120_v44  ;;  %212 = vmatmul.mubr.f32.vlgmr.msra.gmra.mxu0 %v135_v48  ;;  %v1716_v44 = vsub.s32 0, %v399_v43  ;;  %v547_v43 = vld [vmem:[#allocation6 + $0xc0] sm:$0xff] }
  0x47   :  { %1209 = vmatprep.subr.mxu1 %v119_v49  ;;  %1211 = vmatprep.mubr.f32.mxu1 %v143_v50 }
  0x48   :  { %1210 = vmatpush3.msra.mxu1 %v119_v49  ;;  %216 = vmatprep.mubr.f32.mxu0 %v1582_v52 }
  0x49   :  { %1212 = vmatmul.mubr.f32.vlgmr.msra.gmra.mxu1 %v144_v51  ;;  %1217 = vmatprep.subr.mxu0 %v1498_v60 }
  0x4a   :  { %1214 = vmatprep.mubr.f32.mxu1 %v145_v53  ;;  %217 = vmatmul.mubr.f32.gmra.mxu0 %v136_v54 }
  0x4b   :  { %221 = vmatprep.mubr.f32.mxu0 %v1594_v55  ;;  %1252 = vmatprep.subr.mxu1 %v1498_v60 }
  0x4c   :  { %1218 = vmatpush3.msra.mxu0 %v1617_v61  ;;  %1253 = vmatpush3.msra.mxu1 %v1617_v61 }
  0x4d   :  { %1215 = vmatmul.mubr.f32.gmra.mxu1 %v146_v56  ;;  %1219 = vmatprep.subr.mxu0 %v1498_v60 }
  0x4e   :  { %222 = vmatmul.mubr.f32.gmra.mxu0 %v137_v57  ;;  %1254 = vmatprep.subr.mxu1 %v1498_v60 }
  0x4f   :  { %226 = vmatprep.mubr.f32.mxu0 %v1606_v58  ;;  %1220 = vmatpush3.msra.mxu0 %v1623_v62 }
  0x50   :  { %1255 = vmatpush3.msra.mxu1 %v1623_v62  ;;  %1221 = vmatprep.subr.mxu0 %v1498_v60 }
  0x51   :  { %1256 = vmatprep.subr.mxu1 %v1498_v60  ;;  %1222 = vmatpush3.msra.mxu0 %v1629_v63 }
  0x52   :  { %227 = vmatmul.mubr.f32.gmra.mxu0 %v138_v59  ;;  %1257 = vmatpush3.msra.mxu1 %v1629_v63 }
  0x53   :  { %1223 = vmatprep.subr.mxu0 %v1498_v60  ;;  %1258 = vmatprep.subr.mxu1 %v1498_v60 }
  0x54   :  { %1224 = vmatpush3.msra.mxu0 %v1635_v0  ;;  %1259 = vmatpush3.msra.mxu1 %v1635_v0 }
  0x55   :  { %1225 = vmatprep.subr.mxu0 %v1498_v60  ;;  %1260 = vmatprep.subr.mxu1 %v1498_v60 }
  0x56   :  { %1226 = vmatpush3.msra.mxu0 %v1641_v1  ;;  %1261 = vmatpush3.msra.mxu1 %v1641_v1 }
  0x57   :  { %1227 = vmatprep.subr.mxu0 %v1498_v60  ;;  %1262 = vmatprep.subr.mxu1 %v1498_v60 }
  0x58   :  { %1228 = vmatpush3.msra.mxu0 %v1647_v2  ;;  %1263 = vmatpush3.msra.mxu1 %v1647_v2 }
  0x59   :  { %1229 = vmatprep.subr.mxu0 %v1498_v60  ;;  %1264 = vmatprep.subr.mxu1 %v1498_v60 }
  0x5a   :  { %1230 = vmatpush3.msra.mxu0 %v1653_v3  ;;  %1265 = vmatpush3.msra.mxu1 %v1653_v3 }
  0x5b   :  { %1231 = vmatprep.subr.mxu0 %v1498_v60  ;;  %1266 = vmatprep.subr.mxu1 %v1498_v60 }
  0x5c   :  { %1232 = vmatpush3.msra.mxu0 %v1659_v4  ;;  %1267 = vmatpush3.msra.mxu1 %v1659_v4 }
  0x5d   :  { %1233 = vmatprep.subr.mxu0 %v1498_v60  ;;  %1268 = vmatprep.subr.mxu1 %v1498_v60 }
  0x5e   :  { %1234 = vmatpush3.msra.mxu0 %v1665_v5  ;;  %1269 = vmatpush3.msra.mxu1 %v1665_v5 }
  0x5f   :  { %1235 = vmatprep.subr.mxu0 %v1498_v60  ;;  %1270 = vmatprep.subr.mxu1 %v1498_v60 }
  0x60   :  { %1236 = vmatpush3.msra.mxu0 %v1671_v6  ;;  %1271 = vmatpush3.msra.mxu1 %v1671_v6 }
  0x61   :  { %1237 = vmatprep.subr.mxu0 %v1498_v60  ;;  %1272 = vmatprep.subr.mxu1 %v1498_v60 }
  0x62   :  { %1238 = vmatpush3.msra.mxu0 %v1677_v7  ;;  %1273 = vmatpush3.msra.mxu1 %v1677_v7 }
  0x63   :  { %1239 = vmatprep.subr.mxu0 %v1498_v60  ;;  %1274 = vmatprep.subr.mxu1 %v1498_v60 }
  0x64   :  { %1240 = vmatpush3.msra.mxu0 %v1683_v8  ;;  %1275 = vmatpush3.msra.mxu1 %v1683_v8 }
  0x65   :  { %1241 = vmatprep.subr.mxu0 %v1498_v60  ;;  %1276 = vmatprep.subr.mxu1 %v1498_v60 }
  0x66   :  { %1242 = vmatpush3.msra.mxu0 %v1689_v9  ;;  %1277 = vmatpush3.msra.mxu1 %v1689_v9 }
  0x67   :  { %1243 = vmatprep.subr.mxu0 %v1498_v60  ;;  %1278 = vmatprep.subr.mxu1 %v1498_v60 }
  0x68   :  { %1244 = vmatpush3.msra.mxu0 %v1695_v10  ;;  %1279 = vmatpush3.msra.mxu1 %v1695_v10 }
  0x69   :  { %1245 = vmatprep.subr.mxu0 %v1498_v60  ;;  %1280 = vmatprep.subr.mxu1 %v1498_v60 }
  0x6a   :  { %1246 = vmatpush3.msra.mxu0 %v1701_v11  ;;  %1281 = vmatpush3.msra.mxu1 %v1701_v11 }
  0x6b   :  { %1247 = vmatprep.subr.mxu0 %v1498_v60  ;;  %1282 = vmatprep.subr.mxu1 %v1498_v60 }
  0x6c   :  { %1248 = vmatpush3.msra.mxu0 %v1707_v12  ;;  %1249 = vmatprep.mubr.msk.f32.mxu0 %vm1499_vm0, %v1498_v60 }
  0x6d   :  { %1283 = vmatpush3.msra.mxu1 %v1707_v12  ;;  %1284 = vmatprep.mubr.msk.f32.mxu1 %vm1499_vm0, %v1498_v60 }
 0x106   :  { %v1015_v13 = vpop.f32.mrf.mxu0 }
 0x108   :  { %v1016_v14 = vpop.f32.mrf.mxu0 }
 0x109   :  { %v1213_v15 = vpop.f32.mrf.mxu1  ;;  %v1017_v22 = vadd.f32 %v1016_v14, %v1015_v13 }
 0x10a   :  { %v1018_v16 = vpop.f32.mrf.mxu0 }
 0x10b   :  { %v298_v17 = vpop.f32.mrf.mxu1 }
 0x10c   :  { %v1019_v18 = vpop.f32.mrf.mxu0  ;;  %v299_v28 = vadd.f32 %v1017_v22, %v298_v17  ;;  %v554_v22 = vld [vmem:[#allocation6 + $0xf8] sm:$0xff] }
 0x10d   :  { %v1216_v19 = vpop.f32.mrf.mxu1  ;;  %v1020_v20 = vadd.f32 %v1019_v18, %v1018_v16  ;;  %1081 = vmatprep.subr.mxu0 %v554_v22  ;;  %v526_v22 = vld [vmem:[#allocation6 + $0x18] sm:$0xff] }
 0x10e   :  { %v1021_v21 = vpop.f32.mrf.mxu0 }
 0x10f   :  { %v308_v24 = vpop.f32.mrf.mxu1  ;;  %v304_v25 = vadd.f32 %v1213_v15, %v1020_v20 }
 0x110   :  { %v1022_v23 = vpop.f32.mrf.mxu0 }
 0x111   :  { %v1023_v26 = vadd.f32 %v1022_v23, %v1021_v21  ;;  %v319_v31 = vadd.f32 %v304_v25, %v299_v28  ;;  %v570_v23 = vld [vmem:[#allocation6 + $0x178] sm:$0xff] }
 0x112   :  { %v1024_v27 = vpop.f32.mrf.mxu0  ;;  %1287 = vmatprep.subr.mxu1 %v570_v23 }
 0x113   :  { %v309_v29 = vadd.f32 %v1023_v26, %v308_v24  ;;  %v538_v24 = vld [vmem:[#allocation6 + $0x78] sm:$0xff]  ;;  %v569_v26 = vld [vmem:[#allocation6 + $0x170] sm:$0xff] }
 0x114   :  { %v1025_v30 = vpop.f32.mrf.mxu0 }
 0x115   :  { %v1026_v32 = vadd.f32 %v1025_v30, %v1024_v27  ;;  %v320_v33 = vadd.f32 %v319_v31, %v309_v29  ;;  %v537_v27 = vld [vmem:[#allocation6 + $0x70] sm:$0xff]  ;;  %v536_v30 = vld [vmem:[#allocation6 + $0x68] sm:$0xff]  ;;  %v551_v31 = vld [vmem:[#allocation6 + $0xe0] sm:$0xff] }
 0x117   :  { %v314_v34 = vadd.f32 %v1216_v19, %v1026_v32  ;;  %v567_v32 = vld [vmem:[#allocation6 + $0x160] sm:$0xff] }
 0x119   :  { %v321_v35 = vadd.f32 %v320_v33, %v314_v34  ;;  %v535_v33 = vld [vmem:[#allocation6 + $0x60] sm:$0xff] }
 0x11b   :  { %v322_v36 = vrot.slane %v321_v35, 4 }
 0x11d   :  { %v323_v37 = vadd.f32 %v322_v36, %v321_v35  ;;  %v566_v35 = vld [vmem:[#allocation6 + $0x158] sm:$0xff] }
 0x11e   :  { %v534_v36 = vld [vmem:[#allocation6 + $0x58] sm:$0xff] }
 0x11f   :  { %v324_v38 = vrot.slane %v323_v37, 2 }
 0x121   :  { %v325_v39 = vadd.f32 %v324_v38, %v323_v37  ;;  %v549_v37 = vld [vmem:[#allocation6 + $0xd0] sm:$0xff] }
 0x122   :  { %v565_v38 = vld [vmem:[#allocation6 + $0x150] sm:$0xff] }
 0x123   :  { %v326_v40 = vrot.slane %v325_v39, 1 }
 0x125   :  { %v327_v41 = vadd.f32 %v326_v40, %v325_v39  ;;  %v533_v39 = vld [vmem:[#allocation6 + $0x50] sm:$0xff]  ;;  %v548_v40 = vld [vmem:[#allocation6 + $0xc8] sm:$0xff] }
 0x127   :  { %1250 = vmatmul.mubr.f32.vlgmr.msra.gmra.mxu0 %v327_v41  ;;  %v564_v41 = vld [vmem:[#allocation6 + $0x148] sm:$0xff] }
 0x128   :  { %1082 = vmatpush3.msra.mxu0 %v538_v24  ;;  %v557_v24 = vld [vmem:[#allocation6 + $0x110] sm:$0xff] }
 0x1e7   :  { %v394_v45 = vpop.f32.mrf.mxu0 }
 0x1e8   :  { %v401_v47 = vrot.slane %v394_v45, %v1716_v44  ;;  %v563_v45 = vld [vmem:[#allocation6 + $0x140] sm:$0xff] }
 0x1e9   :  { %v1251_v48 = vpop.f32.mrf.mxu0 }
 0x1ea   :  { %v1719_v49 = vsub.f32 %v299_v28, %v401_v47  ;;  %v1721_v50 = vsub.f32 %v304_v25, %v401_v47  ;;  %v1723_v51 = vsub.f32 %v309_v29, %v401_v47  ;;  %v1725_v53 = vsub.f32 %v314_v34, %v401_v47  ;;  %v553_v25 = vld [vmem:[#allocation6 + $0xf0] sm:$0xff]  ;;  %v552_v28 = vld [vmem:[#allocation6 + $0xe8] sm:$0xff]  ;;  %v550_v34 = vld [vmem:[#allocation6 + $0xd8] sm:$0xff] }
 0x1eb   :  { %1083 = vmatprep.subr.mxu0 %v553_v25  ;;  %v568_v29 = vld [vmem:[#allocation6 + $0x168] sm:$0xff]  ;;  %v531_v47 = vld [vmem:[#allocation6 + $0x40] sm:$0xff]  ;;  %v546_v48 = vld [vmem:[#allocation6 + $0xb8] sm:$0xff] }
 0x1ec   :  { %v406_v54 = vmul.f32 %v1719_v49, %v1719_v49  ;;  %v407_v56 = vmul.f32 %v1721_v50, %v1721_v50  ;;  %v408_v57 = vmul.f32 %v1723_v51, %v1723_v51  ;;  %v409_v13 = vmul.f32 %v1725_v53, %v1725_v53  ;;  %1084 = vmatpush3.msra.mxu0 %v537_v27  ;;  %v525_v25 = vld [vmem:[#allocation6 + $0x10] sm:$0xff]  ;;  %v556_v27 = vld [vmem:[#allocation6 + $0x108] sm:$0xff] }
 0x1ed   :  { %1085 = vmatprep.subr.mxu0 %v552_v28  ;;  %v524_v28 = vld [vmem:[#allocation6 + $0x8] sm:$0xff] }
 0x1ee   :  { %v410_v59 = vadd.f32 %v407_v56, %v406_v54  ;;  %1086 = vmatpush3.msra.mxu0 %v536_v30  ;;  %v562_v54 = vld [vmem:[#allocation6 + $0x138] sm:$0xff]  ;;  %v555_v30 = vld [vmem:[#allocation6 + $0x100] sm:$0xff] }
 0x1ef   :  { %1087 = vmatprep.subr.mxu0 %v551_v31  ;;  %v530_v56 = vld [vmem:[#allocation6 + $0x38] sm:$0xff]  ;;  %v523_v31 = vld [vmem:[#allocation6] sm:$0xff] }
 0x1f0   :  { %v411_v14 = vadd.f32 %v410_v59, %v408_v57  ;;  %1088 = vmatpush3.msra.mxu0 %v535_v33  ;;  %v545_v57 = vld [vmem:[#allocation6 + $0xb0] sm:$0xff] }
 0x1f1   :  { %1089 = vmatprep.subr.mxu0 %v550_v34  ;;  %v561_v59 = vld [vmem:[#allocation6 + $0x130] sm:$0xff] }
 0x1f2   :  { %v412_v15 = vadd.f32 %v411_v14, %v409_v13  ;;  %1090 = vmatpush3.msra.mxu0 %v534_v36  ;;  %v529_v13 = vld [vmem:[#allocation6 + $0x30] sm:$0xff]  ;;  %v544_v14 = vld [vmem:[#allocation6 + $0xa8] sm:$0xff] }
 0x1f3   :  { %1091 = vmatprep.subr.mxu0 %v549_v37 }
 0x1f4   :  { %v413_v16 = vrot.slane %v412_v15, 4  ;;  %1092 = vmatpush3.msra.mxu0 %v533_v39  ;;  %v981_v39 = vld [vmem:[%s1835_s3] ss:$0 sm:$0xff] }
 0x1f5   :  { %1093 = vmatprep.subr.mxu0 %v548_v40 }
 0x1f6   :  { %v414_v17 = vadd.f32 %v413_v16, %v412_v15  ;;  %1094 = vmatpush3.msra.mxu0 %v532_v42  ;;  %v560_v15 = vld [vmem:[#allocation6 + $0x128] sm:$0xff] }
 0x1f7   :  { %1095 = vmatprep.subr.mxu0 %v547_v43  ;;  %v528_v16 = vld [vmem:[#allocation6 + $0x28] sm:$0xff] }
 0x1f8   :  { %v415_v18 = vrot.slane %v414_v17, 2  ;;  %1096 = vmatpush3.msra.mxu0 %v531_v47 }
 0x1f9   :  { %1097 = vmatprep.subr.mxu0 %v546_v48 }
 0x1fa   :  { %v416_v19 = vadd.f32 %v415_v18, %v414_v17  ;;  %1098 = vmatpush3.msra.mxu0 %v530_v56  ;;  %v543_v17 = vld [vmem:[#allocation6 + $0xa0] sm:$0xff] }
 0x1fb   :  { %1099 = vmatprep.subr.mxu0 %v545_v57  ;;  %v559_v18 = vld [vmem:[#allocation6 + $0x120] sm:$0xff] }
 0x1fc   :  { %v417_v20 = vrot.slane %v416_v19, 1  ;;  %1100 = vmatpush3.msra.mxu0 %v529_v13 }
 0x1fd   :  { %1101 = vmatprep.subr.mxu0 %v544_v14 }
 0x1fe   :  { %v418_v21 = vadd.f32 %v417_v20, %v416_v19  ;;  %1102 = vmatpush3.msra.mxu0 %v528_v16  ;;  %v527_v19 = vld [vmem:[#allocation6 + $0x20] sm:$0xff]  ;;  %v542_v20 = vld [vmem:[#allocation6 + $0x98] sm:$0xff] }
 0x1ff   :  { %1103 = vmatprep.subr.mxu0 %v543_v17 }
 0x200   :  { %1285 = vmatmul.mubr.f32.vlgmr.msra.gmra.mxu1 %v418_v21  ;;  %1104 = vmatpush3.msra.mxu0 %v527_v19  ;;  %v558_v21 = vld [vmem:[#allocation6 + $0x118] sm:$0xff] }
 0x201   :  { %1288 = vmatpush3.msra.mxu1 %v570_v23  ;;  %1105 = vmatprep.subr.mxu0 %v542_v20  ;;  %v541_v23 = vld [vmem:[#allocation6 + $0x90] sm:$0xff] }
 0x202   :  { %1289 = vmatprep.subr.mxu1 %v569_v26  ;;  %1106 = vmatpush3.msra.mxu0 %v526_v22 }
 0x203   :  { %1290 = vmatpush3.msra.mxu1 %v569_v26  ;;  %v540_v26 = vld [vmem:[#allocation6 + $0x88] sm:$0xff]  ;;  %1107 = vmatprep.subr.mxu0 %v541_v23 }
 0x204   :  { %1291 = vmatprep.subr.mxu1 %v568_v29  ;;  %1108 = vmatpush3.msra.mxu0 %v525_v25 }
 0x205   :  { %1292 = vmatpush3.msra.mxu1 %v568_v29  ;;  %v539_v29 = vld [vmem:[#allocation6 + $0x80] sm:$0xff]  ;;  %1109 = vmatprep.subr.mxu0 %v540_v26 }
 0x206   :  { %1293 = vmatprep.subr.mxu1 %v567_v32  ;;  %1110 = vmatpush3.msra.mxu0 %v524_v28 }
 0x207   :  { %1294 = vmatpush3.msra.mxu1 %v567_v32  ;;  %1111 = vmatprep.subr.mxu0 %v539_v29 }
 0x208   :  { %1295 = vmatprep.subr.mxu1 %v566_v35  ;;  %1112 = vmatpush3.msra.mxu0 %v523_v31 }
 0x209   :  { %1296 = vmatpush3.msra.mxu1 %v566_v35  ;;  %1325 = vmatprep.subr.mxu0 %v1498_v60  ;;  %v317_v35 = vld [vmem:[%s1834_s2] sm:$0x1] }
 0x20a   :  { %1297 = vmatprep.subr.mxu1 %v565_v38 }
 0x20b   :  { %1298 = vmatpush3.msra.mxu1 %v565_v38 }
 0x20c   :  { %1299 = vmatprep.subr.mxu1 %v564_v41 }
 0x20d   :  { %1300 = vmatpush3.msra.mxu1 %v564_v41 }
 0x20e   :  { %1301 = vmatprep.subr.mxu1 %v563_v45 }
 0x20f   :  { %1302 = vmatpush3.msra.mxu1 %v563_v45 }
 0x210   :  { %1303 = vmatprep.subr.mxu1 %v562_v54 }
 0x211   :  { %1304 = vmatpush3.msra.mxu1 %v562_v54 }
 0x212   :  { %1305 = vmatprep.subr.mxu1 %v561_v59 }
 0x213   :  { %1306 = vmatpush3.msra.mxu1 %v561_v59 }
 0x214   :  { %1307 = vmatprep.subr.mxu1 %v560_v15 }
 0x215   :  { %1308 = vmatpush3.msra.mxu1 %v560_v15 }
 0x216   :  { %1309 = vmatprep.subr.mxu1 %v559_v18 }
 0x217   :  { %1310 = vmatpush3.msra.mxu1 %v559_v18 }
 0x218   :  { %1311 = vmatprep.subr.mxu1 %v558_v21 }
 0x219   :  { %1312 = vmatpush3.msra.mxu1 %v558_v21 }
 0x21a   :  { %1313 = vmatprep.subr.mxu1 %v557_v24 }
 0x21b   :  { %1314 = vmatpush3.msra.mxu1 %v557_v24 }
 0x21c   :  { %1315 = vmatprep.subr.mxu1 %v556_v27 }
 0x21d   :  { %1316 = vmatpush3.msra.mxu1 %v556_v27 }
 0x21e   :  { %1317 = vmatprep.subr.mxu1 %v555_v30 }
 0x21f   :  { %1318 = vmatpush3.msra.mxu1 %v555_v30 }
 0x220   :  { %1360 = vmatprep.subr.mxu1 %v1498_v60 }
 0x2c0   :  { %v485_v32 = vpop.f32.mrf.mxu1 }
 0x2c1   :  { %v486_v33 = vadd.f32 1e-05, %v485_v32 }
 0x2c2   :  { %v1286_v34 = vpop.f32.mrf.mxu1 }
 0x2c3   :  { %1403 = vrsqrt.f32 %v486_v33 }
 0x2d0   :  { %v1404_v36 = vpop.eup %1403 }
 0x2d1   :  { %v490_v37 = vmul.f32 %v1404_v36, %v317_v35 }
 0x2d3   :  { %v495_v38 = vrot.slane %v490_v37, %v1716_v44 }
 0x2d5   :  { %v497_v40 = vmul.f32 %v495_v38, %v1719_v49  ;;  %v498_v41 = vmul.f32 %v495_v38, %v1721_v50  ;;  %v499_v42 = vmul.f32 %v495_v38, %v1723_v51  ;;  %v500_v43 = vmul.f32 %v495_v38, %v1725_v53 }
 0x2d7   :  { %v507_v45 = vadd.f32 %v981_v39, %v497_v40  ;;  %v508_v47 = vadd.f32 %v981_v39, %v498_v41  ;;  %v509_v48 = vadd.f32 %v981_v39, %v499_v42  ;;  %v510_v54 = vadd.f32 %v981_v39, %v500_v43 }
 0x2d9   :  { %v511_v56 = vmax.f32 %v507_v45, 0.0  ;;  %v512_v57 = vmax.f32 %v508_v47, 0.0  ;;  %v513_v59 = vmax.f32 %v509_v48, 0.0  ;;  %v514_v13 = vmax.f32 %v510_v54, 0.0 }
 0x2db   :  { %519 = vst [vmem:[#allocation2 + $0x2] sm:$0xff] %v511_v56  ;;  %520 = vst [vmem:[#allocation2 + $0xa] sm:$0xff] %v512_v57  ;;  %647 = vmatprep.mubr.f32.mxu0 %v511_v56 }
 0x2dc   :  { %521 = vst [vmem:[#allocation2 + $0x1a] sm:$0xff] %v513_v59  ;;  %522 = vst [vmem:[#allocation2 + $0x22] sm:$0xff] %v514_v13 }
 0x2e2   :  { %v579_v49 = vld [vmem:[#allocation2 + $0x4] sm:$0xff]  ;;  %v580_v50 = vld [vmem:[#allocation2 + $0xc] sm:$0xff] }
 0x2e3   :  { %v571_v14 = vld [vmem:[#allocation2] sm:$0xff]  ;;  %1319 = vmatprep.mubr.f32.mxu1 %v579_v49  ;;  %v572_v53 = vld [vmem:[#allocation2 + $0x8] sm:$0xff]  ;;  %v573_v16 = vld [vmem:[#allocation2 + $0x18] sm:$0xff] }
 0x2e4   :  { %648 = vmatmul.mubr.f32.vlgmr.msra.gmra.mxu0 %v571_v14  ;;  %1320 = vmatmul.mubr.f32.vlgmr.msra.gmra.mxu1 %v580_v50  ;;  %v581_v51 = vld [vmem:[#allocation2 + $0x1c] sm:$0xff]  ;;  %v582_v15 = vld [vmem:[#allocation2 + $0x24] sm:$0xff] }
 0x2e5   :  { %652 = vmatprep.mubr.f32.mxu0 %v512_v57  ;;  %1322 = vmatprep.mubr.f32.mxu1 %v581_v51  ;;  %v753_v14 = vld [vmem:[%s1837_s5] sm:$0x1]  ;;  %s1467_s5 = scalar_lea.vmem %s969_s26, 512 }
 0x2e6   :  { %1326 = vmatpush3.msra.mxu0 %v1617_v61  ;;  %1361 = vmatpush3.msra.mxu1 %v1617_v61  ;;  %v574_v61 = vld [vmem:[#allocation2 + $0x20] sm:$0xff]  ;;  %p1468_p1 = scmp.ne.s32.totalorder %s969_s26, %s1467_s5  ;;  %p1473_p3 = scmp.lt.s32.totalorder %s1467_s5, %s1467_s5 }
 0x2e7   :  { %1327 = vmatprep.subr.mxu0 %v1498_v60  ;;  %1362 = vmatprep.subr.mxu1 %v1498_v60 }
 0x2e8   :  { %653 = vmatmul.mubr.f32.gmra.mxu0 %v572_v53  ;;  %1323 = vmatmul.mubr.f32.gmra.mxu1 %v582_v15  ;;  %v982_v15 = vld [vmem:[%s1838_s6] ss:$0 sm:$0xff]  ;;  %p1474_p4 = por %p1473_p3, %p1472_p2 }
 0x2e9   :  { %657 = vmatprep.mubr.f32.mxu0 %v513_v59  ;;  %1328 = vmatpush3.msra.mxu0 %v1623_v62 }
 0x2ea   :  { %1363 = vmatpush3.msra.mxu1 %v1623_v62  ;;  %1329 = vmatprep.subr.mxu0 %v1498_v60  ;;  %p1475_p5 = pnand %p1474_p4, %p1468_p1 }
 0x2eb   :  { %1364 = vmatprep.subr.mxu1 %v1498_v60  ;;  %1330 = vmatpush3.msra.mxu0 %v1629_v63 }
 0x2ec   :  { %658 = vmatmul.mubr.f32.gmra.mxu0 %v573_v16  ;;  %1365 = vmatpush3.msra.mxu1 %v1629_v63 }
 0x2ed   :  { %662 = vmatprep.mubr.f32.mxu0 %v514_v13  ;;  %1331 = vmatprep.subr.mxu0 %v1498_v60 }
 0x2ee   :  { %1366 = vmatprep.subr.mxu1 %v1498_v60  ;;  %1332 = vmatpush3.msra.mxu0 %v1635_v0 }
 0x2ef   :  { %1367 = vmatpush3.msra.mxu1 %v1635_v0  ;;  %1333 = vmatprep.subr.mxu0 %v1498_v60 }
 0x2f0   :  { %663 = vmatmul.mubr.f32.gmra.mxu0 %v574_v61  ;;  %1368 = vmatprep.subr.mxu1 %v1498_v60 }
 0x2f1   :  { %1334 = vmatpush3.msra.mxu0 %v1641_v1  ;;  %1357 = vmatprep.mubr.msk.f32.mxu0 %vm1499_vm0, %v1498_v60 }
 0x2f2   :  { %1335 = vmatprep.subr.mxu0 %v1498_v60  ;;  %1369 = vmatpush3.msra.mxu1 %v1641_v1 }
 0x2f3   :  { %1336 = vmatpush3.msra.mxu0 %v1647_v2  ;;  %1370 = vmatprep.subr.mxu1 %v1498_v60 }
 0x2f4   :  { %1337 = vmatprep.subr.mxu0 %v1498_v60  ;;  %1371 = vmatpush3.msra.mxu1 %v1647_v2 }
 0x2f5   :  { %1338 = vmatpush3.msra.mxu0 %v1653_v3  ;;  %1372 = vmatprep.subr.mxu1 %v1498_v60 }
 0x2f6   :  { %1339 = vmatprep.subr.mxu0 %v1498_v60  ;;  %1373 = vmatpush3.msra.mxu1 %v1653_v3 }
 0x2f7   :  { %1340 = vmatpush3.msra.mxu0 %v1659_v4  ;;  %1374 = vmatprep.subr.mxu1 %v1498_v60 }
 0x2f8   :  { %1341 = vmatprep.subr.mxu0 %v1498_v60  ;;  %1375 = vmatpush3.msra.mxu1 %v1659_v4 }
 0x2f9   :  { %1342 = vmatpush3.msra.mxu0 %v1665_v5  ;;  %1376 = vmatprep.subr.mxu1 %v1498_v60 }
 0x2fa   :  { %1343 = vmatprep.subr.mxu0 %v1498_v60  ;;  %1377 = vmatpush3.msra.mxu1 %v1665_v5 }
 0x2fb   :  { %1344 = vmatpush3.msra.mxu0 %v1671_v6  ;;  %1378 = vmatprep.subr.mxu1 %v1498_v60 }
 0x2fc   :  { %1345 = vmatprep.subr.mxu0 %v1498_v60  ;;  %1379 = vmatpush3.msra.mxu1 %v1671_v6 }
 0x2fd   :  { %1346 = vmatpush3.msra.mxu0 %v1677_v7  ;;  %1380 = vmatprep.subr.mxu1 %v1498_v60 }
 0x2fe   :  { %1347 = vmatprep.subr.mxu0 %v1498_v60  ;;  %1381 = vmatpush3.msra.mxu1 %v1677_v7 }
 0x2ff   :  { %1348 = vmatpush3.msra.mxu0 %v1683_v8  ;;  %1382 = vmatprep.subr.mxu1 %v1498_v60 }
 0x300   :  { %1349 = vmatprep.subr.mxu0 %v1498_v60  ;;  %1383 = vmatpush3.msra.mxu1 %v1683_v8 }
 0x301   :  { %1350 = vmatpush3.msra.mxu0 %v1689_v9  ;;  %1384 = vmatprep.subr.mxu1 %v1498_v60 }
 0x302   :  { %1351 = vmatprep.subr.mxu0 %v1498_v60  ;;  %1385 = vmatpush3.msra.mxu1 %v1689_v9 }
 0x303   :  { %1352 = vmatpush3.msra.mxu0 %v1695_v10  ;;  %1386 = vmatprep.subr.mxu1 %v1498_v60 }
 0x304   :  { %1353 = vmatprep.subr.mxu0 %v1498_v60  ;;  %1387 = vmatpush3.msra.mxu1 %v1695_v10 }
 0x305   :  { %1354 = vmatpush3.msra.mxu0 %v1701_v11  ;;  %1388 = vmatprep.subr.mxu1 %v1498_v60 }
 0x306   :  { %1355 = vmatprep.subr.mxu0 %v1498_v60  ;;  %1389 = vmatpush3.msra.mxu1 %v1701_v11 }
 0x307   :  { %1356 = vmatpush3.msra.mxu0 %v1707_v12  ;;  %1390 = vmatprep.subr.mxu1 %v1498_v60 }
 0x308   :  { %1392 = vmatprep.mubr.msk.f32.mxu1 %vm1499_vm0, %v1498_v60  ;;  %1391 = vmatpush3.msra.mxu1 %v1707_v12 }
 0x3a4   :  { %v1113_v62 = vpop.f32.mrf.mxu0  ;;  %v1321_v63 = vpop.f32.mrf.mxu1 }
 0x3a6   :  { %v1114_v0 = vpop.f32.mrf.mxu0  ;;  %v734_v1 = vpop.f32.mrf.mxu1 }
 0x3a7   :  { %v1115_v7 = vadd.f32 %v1114_v0, %v1113_v62 }
 0x3a8   :  { %v1116_v2 = vpop.f32.mrf.mxu0  ;;  %v1324_v5 = vpop.f32.mrf.mxu1 }
 0x3a9   :  { %v735_v18 = vadd.f32 %v1115_v7, %v734_v1 }
 0x3aa   :  { %v1117_v3 = vpop.f32.mrf.mxu0  ;;  %v744_v11 = vpop.f32.mrf.mxu1 }
 0x3ab   :  { %v1118_v4 = vadd.f32 %v1117_v3, %v1116_v2 }
 0x3ac   :  { %v1119_v6 = vpop.f32.mrf.mxu0 }
 0x3ad   :  { %v740_v9 = vadd.f32 %v1321_v63, %v1118_v4 }
 0x3ae   :  { %v1120_v8 = vpop.f32.mrf.mxu0 }
 0x3af   :  { %v1121_v10 = vadd.f32 %v1120_v8, %v1119_v6  ;;  %v755_v20 = vadd.f32 %v740_v9, %v735_v18 }
 0x3b0   :  { %v1122_v17 = vpop.f32.mrf.mxu0 }
 0x3b1   :  { %v745_v19 = vadd.f32 %v1121_v10, %v744_v11 }
 0x3b2   :  { %v1123_v60 = vpop.f32.mrf.mxu0 }
 0x3b3   :  { %v1124_v12 = vadd.f32 %v1123_v60, %v1122_v17  ;;  %v756_v21 = vadd.f32 %v755_v20, %v745_v19 }
 0x3b5   :  { %v750_v22 = vadd.f32 %v1324_v5, %v1124_v12 }
 0x3b7   :  { %v757_v23 = vadd.f32 %v756_v21, %v750_v22 }
 0x3b9   :  { %v758_v24 = vrot.slane %v757_v23, 4 }
 0x3bb   :  { %v759_v25 = vadd.f32 %v758_v24, %v757_v23 }
 0x3bd   :  { %v760_v26 = vrot.slane %v759_v25, 2 }
 0x3bf   :  { %v761_v27 = vadd.f32 %v760_v26, %v759_v25 }
 0x3c1   :  { %v762_v28 = vrot.slane %v761_v27, 1 }
 0x3c3   :  { %v763_v29 = vadd.f32 %v762_v28, %v761_v27 }
 0x3c5   :  { %1358 = vmatmul.mubr.f32.vlgmr.msra.gmra.mxu0 %v763_v29 }
 0x485   :  { %v830_v30 = vpop.f32.mrf.mxu0 }
 0x486   :  { %v837_v31 = vrot.slane %v830_v30, %v1716_v44 }
 0x487   :  { %v1359_v32 = vpop.f32.mrf.mxu0 }
 0x488   :  { %v838_v33 = vsub.f32 %v735_v18, %v837_v31  ;;  %v839_v34 = vsub.f32 %v740_v9, %v837_v31  ;;  %v840_v35 = vsub.f32 %v745_v19, %v837_v31  ;;  %v841_v36 = vsub.f32 %v750_v22, %v837_v31 }
 0x48a   :  { %v842_v37 = vmul.f32 %v838_v33, %v838_v33  ;;  %v843_v38 = vmul.f32 %v839_v34, %v839_v34  ;;  %v844_v39 = vmul.f32 %v840_v35, %v840_v35  ;;  %v845_v41 = vmul.f32 %v841_v36, %v841_v36 }
 0x48c   :  { %v846_v40 = vadd.f32 %v843_v38, %v842_v37 }
 0x48e   :  { %v847_v42 = vadd.f32 %v846_v40, %v844_v39 }
 0x490   :  { %v848_v43 = vadd.f32 %v847_v42, %v845_v41 }
 0x492   :  { %v849_v45 = vrot.slane %v848_v43, 4 }
 0x494   :  { %v850_v47 = vadd.f32 %v849_v45, %v848_v43 }
 0x496   :  { %v851_v48 = vrot.slane %v850_v47, 2 }
 0x498   :  { %v852_v54 = vadd.f32 %v851_v48, %v850_v47 }
 0x49a   :  { %v853_v56 = vrot.slane %v852_v54, 1 }
 0x49c   :  { %v854_v57 = vadd.f32 %v853_v56, %v852_v54 }
 0x49e   :  { %1393 = vmatmul.mubr.f32.vlgmr.msra.gmra.mxu1 %v854_v57 }
 0x55e   :  { %v921_v59 = vpop.f32.mrf.mxu1 }
 0x55f   :  { %v922_v13 = vadd.f32 1e-05, %v921_v59 }
 0x560   :  { %v1394_v49 = vpop.f32.mrf.mxu1 }
 0x561   :  { %1405 = vrsqrt.f32 %v922_v13 }
 0x56e   :  { %v1406_v50 = vpop.eup %1405 }
 0x56f   :  { %v926_v51 = vmul.f32 %v1406_v50, %v753_v14 }
 0x571   :  { %v931_v53 = vrot.slane %v926_v51, %v1716_v44 }
 0x573   :  { %v933_v16 = vmul.f32 %v931_v53, %v838_v33  ;;  %v934_v61 = vmul.f32 %v931_v53, %v839_v34  ;;  %v935_v62 = vmul.f32 %v931_v53, %v840_v35  ;;  %v936_v63 = vmul.f32 %v931_v53, %v841_v36 }
 0x575   :  { %v943_v0 = vadd.f32 %v982_v15, %v933_v16  ;;  %v944_v1 = vadd.f32 %v982_v15, %v934_v61  ;;  %v945_v2 = vadd.f32 %v982_v15, %v935_v62  ;;  %v946_v3 = vadd.f32 %v982_v15, %v936_v63 }
 0x577   :  { %v951_v4 = vadd.f32 %v943_v0, %v1567_v46  ;;  %v952_v5 = vadd.f32 %v944_v1, %v1582_v52  ;;  %v953_v44 = vadd.f32 %v945_v2, %v1594_v55  ;;  %v954_v6 = vadd.f32 %v946_v3, %v1606_v58 }
 0x579   :  { %v955_v7 = vmax.f32 %v951_v4, 0.0  ;;  %v956_v8 = vmax.f32 %v952_v5, 0.0  ;;  %v957_v9 = vmax.f32 %v953_v44, 0.0  ;;  %v958_v10 = vmax.f32 %v954_v6, 0.0 }
 0x57b   :  { %959 = vst [vmem:[#allocation9] sm:$0xff] %v955_v7  ;;  %960 = vst [vmem:[#allocation9 + $0x8] sm:$0xff] %v956_v8 }
 0x57c   :  { %961 = vst [vmem:[#allocation9 + $0x10] sm:$0xff] %v957_v9  ;;  %962 = vst [vmem:[#allocation9 + $0x18] sm:$0xff] %v958_v10 }
 0x57d   :  { %1478 = shalt.err (!%p1475_p5)
}
 0x57e   :  { %974 = dma.vmem_to_hbm [thread:$0]  %s969_s26, 512, %s1840_s8, [#allocation5], %s1495_s10, %s1495_s10, %s1496_s11  }
 0x57f   :  { %1491 = dma.done.wait [#allocation5], 512  }
 0x580   :  { %1492 = vsyncadd [#allocation5], 4294966784 }
 0x581   :  { %978 = vsyncpa [#allocation4], 1 }
 0x582   :  { %979 = vsyncpa [#allocation7], 1 }
 0x583   :  { %980 = vsyncpa [#allocation5], 1 }

</bundles_post_ra>
